<compile_context>
chip_gen: v7x
topology: tpu7x:2x2x1
jax: 0.10.0
libtpu: 0.0.40
codegen_flags: <defaults>
</compile_context>

<pallas_src>
import jax
import jax.numpy as jnp
from jax import lax
from jax.experimental import pallas as pl
from jax.experimental.pallas import tpu as pltpu


def res_block_kernel(x_ref, m1_ref, b1_ref, m2_ref, b2_ref, ms_ref, o_ref):
    # x_ref : (Nb, H+2, W*Cin)   vertically zero-padded images, lane-dense (W,C) flattened
    # m1_ref: (3, W*Cin, W*Cmid) banded block-Toeplitz conv1 weights, one per vertical tap
    # b1_ref: (1, W*Cmid)        conv1 bias tiled across W
    # m2_ref: (3, W*Cmid, W*Cout) banded block-Toeplitz conv2 weights
    # b2_ref: (1, W*Cout)        conv2 bias tiled across W
    # ms_ref: (W*Cin, W*Cout)    block-diagonal 1x1 skip weights
    # o_ref : (Nb, H, W*Cout)    lane-dense output (128 lanes for the test shape)
    Nb, Hp, WC_in = x_ref.shape
    H = Hp - 2
    WC_mid = m1_ref.shape[2]
    WC_out = o_ref.shape[2]

    x = x_ref[...]  # (Nb, H+2, W*Cin)

    # ---- conv1 (3x3, pad=1) + bias + ReLU ----
    # One matmul per vertical tap d; horizontal padding is encoded in the Toeplitz band.
    acc1 = jnp.zeros((Nb * H, WC_mid), jnp.float32)
    for d in range(3):
        xd = x[:, d:d + H, :].reshape(Nb * H, WC_in)
        acc1 = acc1 + jnp.dot(xd, m1_ref[d], preferred_element_type=jnp.float32)
    h = jnp.maximum(acc1 + b1_ref[...], 0.0)              # (Nb*H, W*Cmid)

    # Vertical zero-pad of the hidden activation: sublane-only concat, stays in vregs.
    h3 = h.reshape(Nb, H, WC_mid)
    zrow = jnp.zeros((Nb, 1, WC_mid), jnp.float32)
    hp = jnp.concatenate([zrow, h3, zrow], axis=1)        # (Nb, H+2, W*Cmid)

    # ---- conv2 (3x3, pad=1) + bias + ReLU ----
    acc2 = jnp.zeros((Nb * H, WC_out), jnp.float32)
    for d in range(3):
        hd = hp[:, d:d + H, :].reshape(Nb * H, WC_mid)
        acc2 = acc2 + jnp.dot(hd, m2_ref[d], preferred_element_type=jnp.float32)
    main = jnp.maximum(acc2 + b2_ref[...], 0.0)           # (Nb*H, W*Cout)

    # ---- 1x1 skip conv (block-diagonal matmul on the unpadded center rows) ----
    xc = x[:, 1:H + 1, :].reshape(Nb * H, WC_in)
    skip = jnp.dot(xc, ms_ref[...], preferred_element_type=jnp.float32)

    o_ref[...] = (main + skip).reshape(Nb, H, WC_out).astype(o_ref.dtype)


def make_band_toeplitz(w_hwio, W):
    """w_hwio: (3, 3, Ci, Co) HWIO conv weights -> (3, W*Ci, W*Co) banded block-Toeplitz.

    M_d[x'*Ci + ci, x*Co + co] = w[d, x' - x + 1, ci, co] if |x' - x| <= 1 else 0,
    so (rows @ M_d) performs the horizontal part of the conv (including zero-padding in x).
    """
    _, _, Ci, Co = w_hwio.shape
    dx = jnp.arange(W)[:, None] - jnp.arange(W)[None, :] + 1     # (W_in, W_out)
    valid = (dx >= 0) & (dx <= 2)
    wt = w_hwio[:, jnp.clip(dx, 0, 2)]                           # (3, W_in, W_out, Ci, Co)
    wt = jnp.where(valid[None, :, :, None, None], wt, 0.0)
    wt = jnp.transpose(wt, (0, 1, 3, 2, 4))                      # (3, W_in, Ci, W_out, Co)
    return wt.reshape(3, W * Ci, W * Co)


def make_block_diag(ws, W):
    """ws: (Ci, Co) 1x1 conv weights -> (W*Ci, W*Co) block-diagonal matrix."""
    Ci, Co = ws.shape
    eye = jnp.eye(W, dtype=ws.dtype)
    m = eye[:, None, :, None] * ws[None, :, None, :]             # (W, Ci, W, Co)
    return m.reshape(W * Ci, W * Co)


def residual_block(x_nhwc, w1, b1, w2, b2, ws, images_per_block=1):
    """x_nhwc: (N, H, W, Cin) f32.  w1 (3,3,Cin,Cmid) HWIO, w2 (3,3,Cmid,Cout),
    b1 (Cmid,), b2 (Cout,), ws (Cin, Cout).  Returns (N, H, W, Cout)."""
    N, H, W, Cin = x_nhwc.shape
    Cmid = w1.shape[-1]
    Cout = w2.shape[-1]
    Nb = images_per_block
    assert N % Nb == 0, "batch must be divisible by images_per_block"

    # Lane-dense layout: flatten (W, C) onto the lane axis; pad only vertically (rows).
    x_in = jnp.pad(x_nhwc.reshape(N, H, W * Cin), ((0, 0), (1, 1), (0, 0)))

    m1 = make_band_toeplitz(w1, W)                    # (3, W*Cin,  W*Cmid)
    m2 = make_band_toeplitz(w2, W)                    # (3, W*Cmid, W*Cout)
    ms = make_block_diag(ws, W)                       # (W*Cin, W*Cout)
    b1t = jnp.tile(b1, (W,)).reshape(1, W * Cmid)
    b2t = jnp.tile(b2, (W,)).reshape(1, W * Cout)

    grid_spec = pltpu.PrefetchScalarGridSpec(
        num_scalar_prefetch=0,
        grid=(N // Nb,),
        in_specs=[
            pl.BlockSpec((Nb, H + 2, W * Cin), lambda n: (n, 0, 0)),
            pl.BlockSpec((3, W * Cin, W * Cmid), lambda n: (0, 0, 0)),
            pl.BlockSpec((1, W * Cmid), lambda n: (0, 0)),
            pl.BlockSpec((3, W * Cmid, W * Cout), lambda n: (0, 0, 0)),
            pl.BlockSpec((1, W * Cout), lambda n: (0, 0)),
            pl.BlockSpec((W * Cin, W * Cout), lambda n: (0, 0)),
        ],
        out_specs=pl.BlockSpec((Nb, H, W * Cout), lambda n: (n, 0, 0)),
    )

    out_flat = pl.pallas_call(
        res_block_kernel,
        out_shape=jax.ShapeDtypeStruct((N, H, W * Cout), x_nhwc.dtype),
        grid_spec=grid_spec,
        compiler_params=pltpu.CompilerParams(
            dimension_semantics=("parallel",)),
    )(x_in, m1, b1t, m2, b2t, ms)

    # TODO(synk): for production image sizes (S>=128, C>=128) switch to row-tiled blocks
    # with a 1-row halo instead of whole-image Toeplitz matrices.
    return out_flat.reshape(N, H, W, Cout)


def reference(x_nhwc, w1, b1, w2, b2, ws):
    dn = ("NHWC", "HWIO", "NHWC")
    h = lax.conv_general_dilated(x_nhwc, w1, (1, 1), "SAME",
                                 dimension_numbers=dn) + b1
    h = jnp.maximum(h, 0.0)
    m = lax.conv_general_dilated(h, w2, (1, 1), "SAME",
                                 dimension_numbers=dn) + b2
    m = jnp.maximum(m, 0.0)
    s = lax.conv_general_dilated(x_nhwc, ws[None, None], (1, 1), "SAME",
                                 dimension_numbers=dn)
    return m + s


if __name__ == "__main__":
    key = jax.random.PRNGKey(0)
    k_x, k_w1, k_b1, k_w2, k_b2, k_ws = jax.random.split(key, 6)

    N, C_in, C_mid, C_out, S = 2, 4, 8, 8, 16

    # PyTorch-style NCHW input, transposed to NHWC for the kernel.
    x_nchw = jax.random.normal(k_x, (N, C_in, S, S), jnp.float32)
    x_nhwc = jnp.transpose(x_nchw, (0, 2, 3, 1))

    # Deterministic parameter init (kaiming-ish scaling).
    w1 = jax.random.normal(k_w1, (3, 3, C_in, C_mid), jnp.float32) / (3 * (C_in ** 0.5))
    b1 = jax.random.normal(k_b1, (C_mid,), jnp.float32) * 0.1
    w2 = jax.random.normal(k_w2, (3, 3, C_mid, C_out), jnp.float32) / (3 * (C_mid ** 0.5))
    b2 = jax.random.normal(k_b2, (C_out,), jnp.float32) * 0.1
    ws = jax.random.normal(k_ws, (C_in, C_out), jnp.float32) / (C_in ** 0.5)

    # 1 image per grid step keeps >= 2 parallel steps for v7x's 2 TensorCores; raise
    # images_per_block for larger batches to amortize per-step pipeline overhead.
    out = residual_block(x_nhwc, w1, b1, w2, b2, ws, images_per_block=1)
    out = jax.block_until_ready(out)

    ref = reference(x_nhwc, w1, b1, w2, b2, ws)
    assert out.shape == (N, S, S, C_out)
    assert jnp.allclose(out, ref, rtol=1e-4, atol=1e-4), \
        f"max abs err {jnp.max(jnp.abs(out - ref))}"

    print("KERNEL_OK")
</pallas_src>

<mosaic_0001>
module attributes {stable_mosaic.version = 11 : i64} {
  func.func @res_block_kernel(%arg0: i32, %arg1: memref<1x18x64xf32, #tpu.memory_space<vmem>>, %arg2: memref<3x64x128xf32, #tpu.memory_space<vmem>>, %arg3: memref<1x128xf32, #tpu.memory_space<vmem>>, %arg4: memref<3x128x128xf32, #tpu.memory_space<vmem>>, %arg5: memref<1x128xf32, #tpu.memory_space<vmem>>, %arg6: memref<64x128xf32, #tpu.memory_space<vmem>>, %arg7: memref<1x16x128xf32, #tpu.memory_space<vmem>>) attributes {dimension_semantics = [#tpu.dimension_semantics<parallel>], iteration_bounds = array<i64: 2>, scalar_prefetch = 0 : i64, scratch_operands = 0 : i64, tpu.core_type = #tpu.core_type<tc>, window_params = [{transform_indices = @transform_0, window_bounds = array<i64: 1, 18, 64>}, {pipeline_mode = #tpu.pipeline_mode<synchronous>, transform_indices = @transform_1, window_bounds = array<i64: 3, 64, 128>}, {pipeline_mode = #tpu.pipeline_mode<synchronous>, transform_indices = @transform_2, window_bounds = array<i64: 1, 128>}, {pipeline_mode = #tpu.pipeline_mode<synchronous>, transform_indices = @transform_3, window_bounds = array<i64: 3, 128, 128>}, {pipeline_mode = #tpu.pipeline_mode<synchronous>, transform_indices = @transform_4, window_bounds = array<i64: 1, 128>}, {pipeline_mode = #tpu.pipeline_mode<synchronous>, transform_indices = @transform_5, window_bounds = array<i64: 64, 128>}, {transform_indices = @transform_6, window_bounds = array<i64: 1, 16, 128>}]} {
    %c0 = arith.constant 0 : index
    %c0_0 = arith.constant 0 : index
    %c0_1 = arith.constant 0 : index
    %0 = vector.load %arg1[%c0, %c0_0, %c0_1] : memref<1x18x64xf32, #tpu.memory_space<vmem>>, vector<1x18x64xf32>
    %cst = arith.constant 0.000000e+00 : f32
    %1 = vector.broadcast %cst : f32 to vector<16x128xf32>
    %2 = vector.extract_strided_slice %0 {offsets = [0, 0, 0], sizes = [1, 16, 64], strides = [1, 1, 1]} : vector<1x18x64xf32> to vector<1x16x64xf32>
    %3 = vector.shape_cast %2 : vector<1x16x64xf32> to vector<16x64xf32>
    %c0_2 = arith.constant 0 : index
    %c0_3 = arith.constant 0 : index
    %c0_4 = arith.constant 0 : index
    %4 = vector.load %arg2[%c0_2, %c0_3, %c0_4] : memref<3x64x128xf32, #tpu.memory_space<vmem>>, vector<1x64x128xf32>
    %5 = vector.shape_cast %4 : vector<1x64x128xf32> to vector<64x128xf32>
    %cst_5 = arith.constant dense<0.000000e+00> : vector<16x128xf32>
    %6 = tpu.matmul %3, %5, %cst_5 {dimension_numbers = #tpu.dot_dimension_numbers<[1], [0], [0], [1], [0, 0, 1, 1], [], []>} : vector<16x64xf32>, vector<64x128xf32>, vector<16x128xf32> -> vector<16x128xf32>
    %7 = arith.addf %1, %6 : vector<16x128xf32>
    %8 = vector.extract_strided_slice %0 {offsets = [0, 1, 0], sizes = [1, 16, 64], strides = [1, 1, 1]} : vector<1x18x64xf32> to vector<1x16x64xf32>
    %9 = vector.shape_cast %8 : vector<1x16x64xf32> to vector<16x64xf32>
    %c1 = arith.constant 1 : index
    %c0_6 = arith.constant 0 : index
    %c0_7 = arith.constant 0 : index
    %10 = vector.load %arg2[%c1, %c0_6, %c0_7] : memref<3x64x128xf32, #tpu.memory_space<vmem>>, vector<1x64x128xf32>
    %11 = vector.shape_cast %10 : vector<1x64x128xf32> to vector<64x128xf32>
    %cst_8 = arith.constant dense<0.000000e+00> : vector<16x128xf32>
    %12 = tpu.matmul %9, %11, %cst_8 {dimension_numbers = #tpu.dot_dimension_numbers<[1], [0], [0], [1], [0, 0, 1, 1], [], []>} : vector<16x64xf32>, vector<64x128xf32>, vector<16x128xf32> -> vector<16x128xf32>
    %13 = arith.addf %7, %12 : vector<16x128xf32>
    %14 = vector.extract_strided_slice %0 {offsets = [0, 2, 0], sizes = [1, 16, 64], strides = [1, 1, 1]} : vector<1x18x64xf32> to vector<1x16x64xf32>
    %15 = vector.shape_cast %14 : vector<1x16x64xf32> to vector<16x64xf32>
    %c2 = arith.constant 2 : index
    %c0_9 = arith.constant 0 : index
    %c0_10 = arith.constant 0 : index
    %16 = vector.load %arg2[%c2, %c0_9, %c0_10] : memref<3x64x128xf32, #tpu.memory_space<vmem>>, vector<1x64x128xf32>
    %17 = vector.shape_cast %16 : vector<1x64x128xf32> to vector<64x128xf32>
    %cst_11 = arith.constant dense<0.000000e+00> : vector<16x128xf32>
    %18 = tpu.matmul %15, %17, %cst_11 {dimension_numbers = #tpu.dot_dimension_numbers<[1], [0], [0], [1], [0, 0, 1, 1], [], []>} : vector<16x64xf32>, vector<64x128xf32>, vector<16x128xf32> -> vector<16x128xf32>
    %19 = arith.addf %13, %18 : vector<16x128xf32>
    %c0_12 = arith.constant 0 : index
    %c0_13 = arith.constant 0 : index
    %20 = vector.load %arg3[%c0_12, %c0_13] : memref<1x128xf32, #tpu.memory_space<vmem>>, vector<1x128xf32>
    %21 = vector.broadcast %20 : vector<1x128xf32> to vector<16x128xf32>
    %22 = arith.addf %19, %21 : vector<16x128xf32>
    %cst_14 = arith.constant 0.000000e+00 : f32
    %23 = vector.broadcast %cst_14 : f32 to vector<16x128xf32>
    %24 = arith.maximumf %22, %23 : vector<16x128xf32>
    %25 = vector.shape_cast %24 : vector<16x128xf32> to vector<1x16x128xf32>
    %cst_15 = arith.constant 0.000000e+00 : f32
    %26 = vector.broadcast %cst_15 : f32 to vector<1x1x128xf32>
    %27 = tpu.concatenate %26, %25, %26 in 1 : vector<1x1x128xf32>, vector<1x16x128xf32>, vector<1x1x128xf32> -> vector<1x18x128xf32>
    %cst_16 = arith.constant 0.000000e+00 : f32
    %28 = vector.broadcast %cst_16 : f32 to vector<16x128xf32>
    %29 = vector.extract_strided_slice %27 {offsets = [0, 0, 0], sizes = [1, 16, 128], strides = [1, 1, 1]} : vector<1x18x128xf32> to vector<1x16x128xf32>
    %30 = vector.shape_cast %29 : vector<1x16x128xf32> to vector<16x128xf32>
    %c0_17 = arith.constant 0 : index
    %c0_18 = arith.constant 0 : index
    %c0_19 = arith.constant 0 : index
    %31 = vector.load %arg4[%c0_17, %c0_18, %c0_19] : memref<3x128x128xf32, #tpu.memory_space<vmem>>, vector<1x128x128xf32>
    %32 = vector.shape_cast %31 : vector<1x128x128xf32> to vector<128x128xf32>
    %cst_20 = arith.constant dense<0.000000e+00> : vector<16x128xf32>
    %33 = tpu.matmul %30, %32, %cst_20 {dimension_numbers = #tpu.dot_dimension_numbers<[1], [0], [0], [1], [0, 0, 1, 1], [], []>} : vector<16x128xf32>, vector<128x128xf32>, vector<16x128xf32> -> vector<16x128xf32>
    %34 = arith.addf %28, %33 : vector<16x128xf32>
    %35 = vector.extract_strided_slice %27 {offsets = [0, 1, 0], sizes = [1, 16, 128], strides = [1, 1, 1]} : vector<1x18x128xf32> to vector<1x16x128xf32>
    %36 = vector.shape_cast %35 : vector<1x16x128xf32> to vector<16x128xf32>
    %c1_21 = arith.constant 1 : index
    %c0_22 = arith.constant 0 : index
    %c0_23 = arith.constant 0 : index
    %37 = vector.load %arg4[%c1_21, %c0_22, %c0_23] : memref<3x128x128xf32, #tpu.memory_space<vmem>>, vector<1x128x128xf32>
    %38 = vector.shape_cast %37 : vector<1x128x128xf32> to vector<128x128xf32>
    %cst_24 = arith.constant dense<0.000000e+00> : vector<16x128xf32>
    %39 = tpu.matmul %36, %38, %cst_24 {dimension_numbers = #tpu.dot_dimension_numbers<[1], [0], [0], [1], [0, 0, 1, 1], [], []>} : vector<16x128xf32>, vector<128x128xf32>, vector<16x128xf32> -> vector<16x128xf32>
    %40 = arith.addf %34, %39 : vector<16x128xf32>
    %41 = vector.extract_strided_slice %27 {offsets = [0, 2, 0], sizes = [1, 16, 128], strides = [1, 1, 1]} : vector<1x18x128xf32> to vector<1x16x128xf32>
    %42 = vector.shape_cast %41 : vector<1x16x128xf32> to vector<16x128xf32>
    %c2_25 = arith.constant 2 : index
    %c0_26 = arith.constant 0 : index
    %c0_27 = arith.constant 0 : index
    %43 = vector.load %arg4[%c2_25, %c0_26, %c0_27] : memref<3x128x128xf32, #tpu.memory_space<vmem>>, vector<1x128x128xf32>
    %44 = vector.shape_cast %43 : vector<1x128x128xf32> to vector<128x128xf32>
    %cst_28 = arith.constant dense<0.000000e+00> : vector<16x128xf32>
    %45 = tpu.matmul %42, %44, %cst_28 {dimension_numbers = #tpu.dot_dimension_numbers<[1], [0], [0], [1], [0, 0, 1, 1], [], []>} : vector<16x128xf32>, vector<128x128xf32>, vector<16x128xf32> -> vector<16x128xf32>
    %46 = arith.addf %40, %45 : vector<16x128xf32>
    %c0_29 = arith.constant 0 : index
    %c0_30 = arith.constant 0 : index
    %47 = vector.load %arg5[%c0_29, %c0_30] : memref<1x128xf32, #tpu.memory_space<vmem>>, vector<1x128xf32>
    %48 = vector.broadcast %47 : vector<1x128xf32> to vector<16x128xf32>
    %49 = arith.addf %46, %48 : vector<16x128xf32>
    %cst_31 = arith.constant 0.000000e+00 : f32
    %50 = vector.broadcast %cst_31 : f32 to vector<16x128xf32>
    %51 = arith.maximumf %49, %50 : vector<16x128xf32>
    %52 = vector.extract_strided_slice %0 {offsets = [0, 1, 0], sizes = [1, 16, 64], strides = [1, 1, 1]} : vector<1x18x64xf32> to vector<1x16x64xf32>
    %53 = vector.shape_cast %52 : vector<1x16x64xf32> to vector<16x64xf32>
    %c0_32 = arith.constant 0 : index
    %c0_33 = arith.constant 0 : index
    %54 = vector.load %arg6[%c0_32, %c0_33] : memref<64x128xf32, #tpu.memory_space<vmem>>, vector<64x128xf32>
    %cst_34 = arith.constant dense<0.000000e+00> : vector<16x128xf32>
    %55 = tpu.matmul %53, %54, %cst_34 {dimension_numbers = #tpu.dot_dimension_numbers<[1], [0], [0], [1], [0, 0, 1, 1], [], []>} : vector<16x64xf32>, vector<64x128xf32>, vector<16x128xf32> -> vector<16x128xf32>
    %56 = arith.addf %51, %55 : vector<16x128xf32>
    %57 = vector.shape_cast %56 : vector<16x128xf32> to vector<1x16x128xf32>
    %c0_35 = arith.constant 0 : index
    %c0_36 = arith.constant 0 : index
    %c0_37 = arith.constant 0 : index
    %58 = vector.load %arg7[%c0_35, %c0_36, %c0_37] : memref<1x16x128xf32, #tpu.memory_space<vmem>>, vector<1x16x128xf32>
    tpu.vector_store %arg7[%c0_35, %c0_36, %c0_37], %57 {strides = array<i32>} : memref<1x16x128xf32, #tpu.memory_space<vmem>>, vector<1x16x128xf32>,
    return
  }
  func.func @transform_0(%arg0: i32) -> (i32, i32, i32) {
    %c0_i32 = arith.constant 0 : i32
    %c0_i32_0 = arith.constant 0 : i32
    %c0_i32_1 = arith.constant 0 : i32
    return %arg0, %c0_i32, %c0_i32_0 : i32, i32, i32
  }
  func.func @transform_1(%arg0: i32) -> (i32, i32, i32) {
    %c0_i32 = arith.constant 0 : i32
    %c0_i32_0 = arith.constant 0 : i32
    %c0_i32_1 = arith.constant 0 : i32
    %c0_i32_2 = arith.constant 0 : i32
    return %c0_i32, %c0_i32_0, %c0_i32_1 : i32, i32, i32
  }
  func.func @transform_2(%arg0: i32) -> (i32, i32) {
    %c0_i32 = arith.constant 0 : i32
    %c0_i32_0 = arith.constant 0 : i32
    %c0_i32_1 = arith.constant 0 : i32
    return %c0_i32, %c0_i32_0 : i32, i32
  }
  func.func @transform_3(%arg0: i32) -> (i32, i32, i32) {
    %c0_i32 = arith.constant 0 : i32
    %c0_i32_0 = arith.constant 0 : i32
    %c0_i32_1 = arith.constant 0 : i32
    %c0_i32_2 = arith.constant 0 : i32
    return %c0_i32, %c0_i32_0, %c0_i32_1 : i32, i32, i32
  }
  func.func @transform_4(%arg0: i32) -> (i32, i32) {
    %c0_i32 = arith.constant 0 : i32
    %c0_i32_0 = arith.constant 0 : i32
    %c0_i32_1 = arith.constant 0 : i32
    return %c0_i32, %c0_i32_0 : i32, i32
  }
  func.func @transform_5(%arg0: i32) -> (i32, i32) {
    %c0_i32 = arith.constant 0 : i32
    %c0_i32_0 = arith.constant 0 : i32
    %c0_i32_1 = arith.constant 0 : i32
    return %c0_i32, %c0_i32_0 : i32, i32
  }
  func.func @transform_6(%arg0: i32) -> (i32, i32, i32) {
    %c0_i32 = arith.constant 0 : i32
    %c0_i32_0 = arith.constant 0 : i32
    %c0_i32_1 = arith.constant 0 : i32
    return %arg0, %c0_i32, %c0_i32_0 : i32, i32, i32
  }
}

</mosaic_0001>

<bundles_post_ra>
// kernel: tpu_custom_call.1
= control target key start
LH: loop header
LB: loop body
LE: loop exit
PB: predicated region body
PF: predicated region fallthrough
CT: control target
= control target key end

     0   :  { %11 = vsyncpa [#allocation3], 0  ;;  %s2031_s0 = inlined_call_operand.vmem [shape: f32[2,18,64], index: 0, kind: input, shape index: {}]   ;;  %s2032_s1 = inlined_call_operand.hbm [shape: f32[3,64,128], index: 1, kind: input, shape index: {}]   ;;  %s2033_s2 = inlined_call_operand.vmem [shape: f32[1,128], index: 2, kind: input, shape index: {}]   ;;  %s2034_s3 = inlined_call_operand.hbm [shape: f32[3,128,128], index: 3, kind: input, shape index: {}]   ;;  %s2035_s4 = inlined_call_operand.vmem [shape: f32[1,128], index: 4, kind: input, shape index: {}]   ;;  %s2036_s5 = inlined_call_operand.vmem [shape: f32[64,128], index: 5, kind: input, shape index: {}]   ;;  %s2037_s6 = inlined_call_operand.hbm [shape: f32[2,16,128], index: 6, kind: output, shape index: {}]  }
   0x1   :  { %12 = vsyncpa [#allocation6], 0 }
   0x2   :  { %13 = vsyncpa [#allocation4], 0 }
   0x3   :  { %15 = vsyncpa [#allocation4 + $0x1], 0  ;;  %s1781_s21 = smov 0   ;;  %s1783_s22 = smov 0  }
   0x4   :  { %s1785_s23 = smov 0   ;;  %s1787_s24 = smov 0  }
   0x5 LB: > { %s1802_s25 = sadd.s32 4294967295, %s1737_s24   ;;  %s1075_s26 = sadd.s32 4294967294, %s1737_s24   ;;  %s1737_s24 = sphi %s1787_s24, %s2055_s24   ;;  %s1733_s23 = sphi %s1785_s23, %s2054_s23   ;;  %s1729_s22 = sphi %s1783_s22, %s2053_s22   ;;  %s1725_s21 = sphi %s1781_s21, %s2052_s21  }
   0x6   : > { %s1806_s27 = sadd.s32 1, %s1737_s24   ;;  %s159_s28 = sadd.s32 1, %s1733_s23 }
   0x7   : > { %s156_s29 = ssub.s32 %s1737_s24, %s1806_s27  ;;  %p169_p0 = scmp.ne.s32.totalorder %s1733_s23, %s1729_s22 }
   0x8   : > { %p157_p1 = scmp.eq.s32.totalorder %s156_s29, 0  ;;  %p170_p2 = scmp.eq.s32.totalorder %s1802_s25, 1 }
   0x9   : > { %p175_p3 = scmp.ne.s32.totalorder %s1729_s22, %s1725_s21  ;;  %p176_p4 = scmp.eq.s32.totalorder %s1075_s26, 1 }
   0xa   : > { %s1817_s30 = scalar_select %p157_p1, %s1733_s23, %s159_s28  }
   0xb   : > { %p1819_p5 = por %p170_p2, %p169_p0  ;;  %p1823_p6 = por %p176_p4, %p175_p3 }
   0xc   : > { %p1076_p7 = scmp.ge.s32.totalorder %s1737_s24, 1  ;;  %p183_p8 = scmp.lt.s32.totalorder %s1737_s24, 3 }
   0xd   : > { %s2041_s7 = scalar_select %p1819_p5, 1, 0 }
   0xe   : > { %s2042_s8 = scalar_select %p1823_p6, 1, 0 }
   0xf   : > { %p2038_p9 = scmp.eq.s32.totalorder %s1802_s25, 0  ;;  %p1830_p10 = pnand %p1076_p7, %p183_p8 }
  0x10   : > { %s1739_s10 = smov [#allocation2]   ;;  %s1740_s13 = smov [#allocation5]  }
  0x11   : > { %s2043_s9 = scalar_select %p1830_p10, 1, 0 }
  0x12   : > { %s195_s11 = sshll.u32 %s1739_s10, 4  ;;  %p1557_p11 = pneg %p1830_p10  ;;  %s196_s11 = int_to_ptr.vmem [resolvable:$true] %s195_s11 }
  0x13   : > { %s211_s14 = sshll.u32 %s1740_s13, 4  ;;  %s1611_s17 = scalar_lea.hbm %s2032_s1, 3072  ;;  %s1842_s14 = int_to_ptr.vmem [resolvable:$true] %s211_s14 }
  0x14   : > { %p1838_p12 = pnand %p2038_p9, %p1557_p11  ;;  %p1612_p13 = scmp.ne.s32.totalorder %s2032_s1, %s1611_s17 }
  0x15   : > { %p1618_p3 = scmp.lt.u32.totalorder %s1611_s17, %s2032_s1 }
  0x16   : > { %p1613_p0 = pneg %p1838_p12 }
  0x18   : > { %p1614_p1 = pnand %p1613_p0, %p1612_p13 }
  0x1a   : > { %p1615_p2 = pneg %p1614_p1 }
  0x1c   : > { %p1620_p4 = pnand %p1618_p3, %p1615_p2 }
  0x1e   : > { %1623 = shalt.err (!%p1620_p4)
}
  0x1f   : > { %s1624_s28 = scalar_lea.vmem %s196_s11, 3072  ;;  %p1632_p9 = scmp.lt.s32.totalorder %s196_s11, %s196_s11 }
  0x20   : > { %p1625_p7 = scmp.ne.s32.totalorder %s196_s11, %s1624_s28  ;;  %p1633_p6 = scmp.lt.s32.totalorder %s1624_s28, %s1624_s28 }
  0x22   : > { %p1627_p8 = pnand %p1625_p7, %p1613_p0  ;;  %p1634_p5 = por %p1633_p6, %p1632_p9 }
  0x24   : > { %p1628_p11 = pneg %p1627_p8 }
  0x26   : > { %p1635_p10 = pnand %p1634_p5, %p1628_p11 }
  0x28   : > { %1638 = shalt.err (!%p1635_p10)
}
  0x29   : > { %s1741_s29 = smov 128   ;;  %s1742_s10 = smov 8  }
  0x2a   : > { %1560 = dma.hbm_to_vmem [thread:$0]  (!%p1838_p12), %s2032_s1, 3072, %s196_s11, [#allocation3], %s1741_s29, %s1741_s29, %s1742_s10  }
  0x2b   : > { %s1639_s18 = scalar_lea.hbm %s2034_s3, 6144 }
  0x2c   : > { %p1640_p13 = scmp.ne.s32.totalorder %s2034_s3, %s1639_s18  ;;  %p1646_p9 = scmp.lt.u32.totalorder %s1639_s18, %s2034_s3 }
  0x2e   : > { %p1642_p5 = pnand %p1640_p13, %p1613_p0 }
  0x30   : > { %p1643_p6 = pneg %p1642_p5 }
  0x32   : > { %p1648_p10 = pnand %p1646_p9, %p1643_p6 }
  0x34   : > { %1651 = shalt.err (!%p1648_p10)
}
  0x35   : > { %s1652_s11 = scalar_lea.vmem %s1842_s14, 6144  ;;  %p1660_p4 = scmp.lt.s32.totalorder %s1842_s14, %s1842_s14 }
  0x36   : > { %p1653_p1 = scmp.ne.s32.totalorder %s1842_s14, %s1652_s11  ;;  %p1661_p7 = scmp.lt.s32.totalorder %s1652_s11, %s1652_s11 }
  0x38   : > { %p1655_p2 = pnand %p1653_p1, %p1613_p0  ;;  %p1662_p8 = por %p1661_p7, %p1660_p4 }
  0x3a   : > { %p1656_p3 = pneg %p1655_p2 }
  0x3c   : > { %p1663_p11 = pnand %p1662_p8, %p1656_p3 }
  0x3e   : > { %1666 = shalt.err (!%p1663_p11)
}
  0x3f   : > { %1563 = dma.hbm_to_vmem [thread:$0]  (!%p1838_p12), %s2034_s3, 6144, %s1842_s14, [#allocation6], %s1741_s29, %s1741_s29, %s1742_s10  }
  0x40   : > { %p2045_p13 = scmp.ne.s32.totalorder %s2043_s9, 0 }
  0x41   : > { %p2046_p5 = scmp.eq.s32.totalorder (!%p2045_p13), %s1802_s25, 0 }
  0x42   : > { %241 = sbr.rel (%p2045_p13) target bundleno = 651 (0x28b), region = 44 }
  0x49   : > { %1712 = dma.done.wait (%p2046_p5), [#allocation3], 3072   ;;  %p2047_p0 = pmov %p2046_p5 }
  0x4b   : > { %1714 = vsyncadd (%p2047_p0), [#allocation3], 4294964224  ;;  %p2048_p6 = pmov %p2047_p0 }
  0x4c   : > { %p2049_p9 = pmov %p2047_p0 }
  0x4d   : > { %1716 = dma.done.wait (%p2048_p6), [#allocation6], 6144  }
  0x4e   : > { %1718 = vsyncadd (%p2049_p9), [#allocation6], 4294961152  ;;  %p275_p10 = scmp.lt.s32.totalorder %s1802_s25, 1  ;;  %v292_v0 = vld [vmem:[#allocation2 + $0x40] sm:$0xff]  ;;  %v293_v1 = vld [vmem:[#allocation2 + $0x48] sm:$0xff]  ;;  %vm303_vm0 = vcmask 1046528  }
  0x4f   : > { %v294_v2 = vld [vmem:[#allocation2 + $0x50] sm:$0xff]  ;;  %v1378_v3 = vpack.c.bf16 %v293_v1, %v292_v0  ;;  %v295_v4 = vld [vmem:[#allocation2 + $0x58] sm:$0xff]  ;;  %v296_v6 = vld [vmem:[#allocation2 + $0x60] sm:$0xff]  ;;  %vm309_vm1 = vcmask 523264   ;;  %vm477_vm2 = vcmask 1045504   ;;  %vm577_vm3 = vcmask 1040384  }
  0x50   : > { %s276_s12 = scalar_select %p275_p10, %s1802_s25, 1  ;;  %v1382_v5 = vpack.c.bf16 %v295_v4, %v294_v2  ;;  %v297_v7 = vld [vmem:[#allocation2 + $0x68] sm:$0xff]  ;;  %v298_v13 = vld [vmem:[#allocation2 + $0x70] sm:$0xff]  ;;  %v299_v14 = vld [vmem:[#allocation2 + $0x78] sm:$0xff] }
  0x51   : > { %1379 = vmatprep.subr.bf16.mxu0 %v1378_v3  ;;  %v1386_v12 = vpack.c.bf16 %v297_v7, %v296_v6  ;;  %v1390_v17 = vpack.c.bf16 %v299_v14, %v298_v13  ;;  %v603_v18 = vld [vmem:[#allocation5 + $0x80] sm:$0xff]  ;;  %v604_v19 = vld [vmem:[#allocation5 + $0x88] sm:$0xff]  ;;  %v605_v20 = vld [vmem:[#allocation5 + $0x90] sm:$0xff]  ;;  %s272_s19 = sand.u32 1, %s1729_s22   ;;  %s1102_s15 = sshll.u32 %s1802_s25, 8 }
  0x52   : > { %s1546_s14 = smul.u32 24, %s276_s12  ;;  %1381 = vmatpush3.bf16.msra.mxu0 %v1378_v3  ;;  %v283_v21 = vld [vmem:[#allocation2] sm:$0xff]  ;;  %v284_v22 = vld [vmem:[#allocation2 + $0x8] sm:$0xff]  ;;  %v1426_v23 = vpack.c.bf16 %v604_v19, %v603_v18  ;;  %v606_v24 = vld [vmem:[#allocation5 + $0x98] sm:$0xff]  ;;  %s1083_s20 = sshll.u32 %s272_s19, 4 }
  0x53   : > { %1383 = vmatprep.subr.bf16.mxu0 %v1382_v5  ;;  %v1430_v25 = vpack.c.bf16 %v606_v24, %v605_v20  ;;  %v607_v26 = vld [vmem:[#allocation5 + $0xa0] sm:$0xff]  ;;  %v608_v27 = vld [vmem:[#allocation5 + $0xa8] sm:$0xff]  ;;  %v1394_v29 = vpack.c.bf16 %v284_v22, %v283_v21  ;;  %v285_v30 = vld [vmem:[#allocation2 + $0x10] sm:$0xff]  ;;  %s274_s11 = scalar_lea.vmem [#allocation7], %s1083_s20  ;;  %s1988_s29 = scalar_lea.hbm %s2037_s6, %s1102_s15 }
  0x54   : > { %s279_s10 = scalar_lea.vmem %s2031_s0, %s1546_s14  ;;  %1427 = vmatprep.subr.bf16.mxu1 %v1426_v23  ;;  %v286_v31 = vld [vmem:[#allocation2 + $0x18] sm:$0xff]  ;;  %v1434_v32 = vpack.c.bf16 %v608_v27, %v607_v26  ;;  %v609_v33 = vld [vmem:[#allocation5 + $0xb0] sm:$0xff]  ;;  %v287_v37 = vld [vmem:[#allocation2 + $0x20] sm:$0xff]  ;;  %s991_s13 = sshll.u32 %s274_s11, 4  ;;  %s1983_s13 = int_to_ptr.vmem [resolvable:$true] %s991_s13 }
  0x55   : > { %v1906_v8 = vld [vmem:[%s279_s10] sm:$0xff]  ;;  %v1908_v9 = vld [vmem:[%s279_s10 + $0x8] sm:$0xff]  ;;  %v1917_v16 = vld [vmem:[%s279_s10 + $0x10] sm:$0x3]  ;;  %1429 = vmatpush3.bf16.msra.mxu1 %v1426_v23  ;;  %v1398_v36 = vpack.c.bf16 %v286_v31, %v285_v30  ;;  %s1990_s9 = scalar_lea.sflag [#allocation4], %s272_s19  ;;  %s1667_s10 = scalar_lea.vmem %s1983_s13, 256 }
  0x56   : > { %v304_v10 = vrot.slane %v1906_v8, 1  ;;  %v305_v11 = vrot.slane %v1908_v9, 1  ;;  %1385 = vmatpush3.bf16.msra.mxu0 %v1382_v5  ;;  %v307_v28 = vrot.slane %v1917_v16, 1  ;;  %1431 = vmatprep.subr.bf16.mxu1 %v1430_v25  ;;  %v610_v34 = vld [vmem:[#allocation5 + $0xb8] sm:$0xff]  ;;  %v288_v38 = vld [vmem:[#allocation2 + $0x28] sm:$0xff]  ;;  %v611_v40 = vld [vmem:[#allocation5 + $0xc0] sm:$0xff]  ;;  %p1668_p12 = scmp.ne.s32.totalorder %s1983_s13, %s1667_s10 }
  0x57   : > { %1387 = vmatprep.subr.bf16.mxu0 %v1386_v12  ;;  %v1438_v39 = vpack.c.bf16 %v610_v34, %v609_v33  ;;  %v612_v41 = vld [vmem:[#allocation5 + $0xc8] sm:$0xff]  ;;  %v1402_v42 = vpack.c.bf16 %v288_v38, %v287_v37  ;;  %v289_v43 = vld [vmem:[#allocation2 + $0x30] sm:$0xff]  ;;  %v290_v44 = vld [vmem:[#allocation2 + $0x38] sm:$0xff]  ;;  %v478_v50 = vrot.slane %v1906_v8, 2  ;;  %v479_v51 = vrot.slane %v1908_v9, 2  ;;  %p2050_p1 = scmp.ne.s32.totalorder %s2041_s7, 0 }
  0x58   : > { %v1913_v15 = vsel %vm303_vm0, %v304_v10, %v305_v11  ;;  %v1921_v35 = vsel %vm303_vm0, %v305_v11, %v307_v28  ;;  %v1442_v45 = vpack.c.bf16 %v612_v41, %v611_v40  ;;  %v1406_v46 = vpack.c.bf16 %v290_v44, %v289_v43  ;;  %v469_v47 = vld [vmem:[#allocation2 + $0x80] sm:$0xff]  ;;  %v470_v48 = vld [vmem:[#allocation2 + $0x88] sm:$0xff]  ;;  %v471_v52 = vld [vmem:[#allocation2 + $0x90] sm:$0xff]  ;;  %s1743_s25 = smov [#allocation7]  }
  0x59   : > { %1213 = vmatprep.mubr.msk.f32.mxu0 %vm309_vm1, %v1913_v15  ;;  %1433 = vmatpush3.bf16.msra.mxu1 %v1430_v25  ;;  %v1410_v49 = vpack.c.bf16 %v470_v48, %v469_v47  ;;  %v472_v53 = vld [vmem:[#allocation2 + $0x98] sm:$0xff]  ;;  %v480_v55 = vsel %vm477_vm2, %v478_v50, %v479_v51  ;;  %v473_v56 = vld [vmem:[#allocation2 + $0xa0] sm:$0xff]  ;;  %v474_v57 = vld [vmem:[#allocation2 + $0xa8] sm:$0xff]  ;;  %v481_v62 = vrot.slane %v1917_v16, 2  ;;  %p1669_p2 = pnand %p1668_p12, %p2050_p1  ;;  %s1671_s16 = sshll.u32 %s1743_s25, 4  ;;  %s1672_s16 = int_to_ptr.vmem [resolvable:$false] %s1671_s16 }
  0x5a   : > { %1389 = vmatpush3.bf16.msra.mxu0 %v1386_v12  ;;  %1435 = vmatprep.subr.bf16.mxu1 %v1434_v32  ;;  %v1414_v54 = vpack.c.bf16 %v472_v53, %v471_v52  ;;  %v1418_v58 = vpack.c.bf16 %v474_v57, %v473_v56  ;;  %v475_v59 = vld [vmem:[#allocation2 + $0xb0] sm:$0xff]  ;;  %v476_v60 = vld [vmem:[#allocation2 + $0xb8] sm:$0xff]  ;;  %v615_v3 = vld [vmem:[#allocation5 + $0xe0] sm:$0xff]  ;;  %s1673_s17 = scalar_lea.vmem %s1672_s16, 512  ;;  %p1674_p4 = scmp.lt.s32.totalorder %s1983_s13, %s1672_s16 }
  0x5b   : > { %1391 = vmatprep.subr.bf16.mxu0 %v1390_v17  ;;  %v1422_v61 = vpack.c.bf16 %v476_v60, %v475_v59  ;;  %v482_v63 = vsel %vm477_vm2, %v479_v51, %v481_v62  ;;  %v613_v0 = vld [vmem:[#allocation5 + $0xd0] sm:$0xff]  ;;  %v614_v1 = vld [vmem:[#allocation5 + $0xd8] sm:$0xff]  ;;  %v616_v4 = vld [vmem:[#allocation5 + $0xe8] sm:$0xff]  ;;  %p1670_p3 = pneg %p1669_p2  ;;  %p1675_p7 = scmp.lt.s32.totalorder %s1673_s17, %s1667_s10 }
  0x5c   : > { %v1446_v2 = vpack.c.bf16 %v614_v1, %v613_v0  ;;  %v1450_v5 = vpack.c.bf16 %v616_v4, %v615_v3  ;;  %v617_v6 = vld [vmem:[#allocation5 + $0xf0] sm:$0xff]  ;;  %v618_v7 = vld [vmem:[#allocation5 + $0xf8] sm:$0xff]  ;;  %v587_v10 = vld [vmem:[#allocation5 + $0x8] sm:$0xff] }
  0x5d   : > { %1437 = vmatpush3.bf16.msra.mxu1 %v1434_v32  ;;  %v890_v12 = vld [vmem:[%s2036_s5] sm:$0xff]  ;;  %v891_v13 = vld [vmem:[%s2036_s5 + $0x8] sm:$0xff]  ;;  %v893_v16 = vld [vmem:[%s2036_s5 + $0x18] sm:$0xff]  ;;  %p1676_p8 = por %p1675_p7, %p1674_p4 }
  0x5e   : > { %1393 = vmatpush3.bf16.msra.mxu0 %v1390_v17  ;;  %1439 = vmatprep.subr.bf16.mxu1 %v1438_v39  ;;  %v1522_v14 = vpack.c.bf16 %v891_v13, %v890_v12  ;;  %v894_v18 = vld [vmem:[%s2036_s5 + $0x20] sm:$0xff]  ;;  %v895_v19 = vld [vmem:[%s2036_s5 + $0x28] sm:$0xff]  ;;  %v896_v21 = vld [vmem:[%s2036_s5 + $0x30] sm:$0xff] }
  0x5f   : > { %1395 = vmatprep.subr.bf16.mxu0 %v1394_v29  ;;  %v1530_v20 = vpack.c.bf16 %v895_v19, %v894_v18  ;;  %v897_v22 = vld [vmem:[%s2036_s5 + $0x38] sm:$0xff]  ;;  %v1091_v24 = vld [vmem:[%s2033_s2] ss:$0 sm:$0xff]  ;;  %v588_v34 = vld [vmem:[#allocation5 + $0x10] sm:$0xff]  ;;  %p1677_p11 = pnand %p1676_p8, %p1670_p3 }
  0x60   : > { %v1534_v23 = vpack.c.bf16 %v897_v22, %v896_v21  ;;  %vm1092_vm4 = vmneg %vm577_vm3  ;;  %v591_v50 = vld [vmem:[#allocation5 + $0x28] sm:$0xff]  ;;  %v592_v52 = vld [vmem:[#allocation5 + $0x30] sm:$0xff] }
  0x61   : > { %1214 = vmatmul.mubr.msk.f32.vlgmr.msra.gmra.mrb[0].mxu0 %vm309_vm1, %v1921_v35  ;;  %1441 = vmatpush3.bf16.msra.mxu1 %v1438_v39  ;;  %v593_v53 = vld [vmem:[#allocation5 + $0x38] sm:$0xff]  ;;  %v595_v56 = vld [vmem:[#allocation5 + $0x48] sm:$0xff]  ;;  %v600_v0 = vld [vmem:[#allocation5 + $0x70] sm:$0xff] }
  0x62   : > { %1397 = vmatpush3.bf16.msra.mxu0 %v1394_v29  ;;  %1232 = vmatprep.mubr.msk.f32.mxu0 %vm309_vm1, %v1906_v8  ;;  %v1454_v8 = vpack.c.bf16 %v618_v7, %v617_v6  ;;  %v597_v59 = vld [vmem:[#allocation5 + $0x58] sm:$0xff]  ;;  %v599_v62 = vld [vmem:[#allocation5 + $0x68] sm:$0xff]  ;;  %v779_v3 = vld [vmem:[#allocation5 + $0x100] sm:$0xff] }
  0x63   : > { %1399 = vmatprep.subr.bf16.mxu0 %v1398_v36  ;;  %1443 = vmatprep.subr.bf16.mxu1 %v1442_v45  ;;  %v601_v1 = vld [vmem:[#allocation5 + $0x78] sm:$0xff]  ;;  %v780_v4 = vld [vmem:[#allocation5 + $0x108] sm:$0xff]  ;;  %v781_v6 = vld [vmem:[#allocation5 + $0x110] sm:$0xff] }
  0x64   : > { %v782_v7 = vld [vmem:[#allocation5 + $0x118] sm:$0xff]  ;;  %v785_v12 = vld [vmem:[#allocation5 + $0x130] sm:$0xff]  ;;  %v791_v21 = vld [vmem:[#allocation5 + $0x160] sm:$0xff] }
  0x65   : > { %1445 = vmatpush3.bf16.msra.mxu1 %v1442_v45  ;;  %v786_v13 = vld [vmem:[#allocation5 + $0x138] sm:$0xff]  ;;  %v789_v18 = vld [vmem:[#allocation5 + $0x150] sm:$0xff]  ;;  %v792_v22 = vld [vmem:[#allocation5 + $0x168] sm:$0xff] }
  0x66   : > { %1401 = vmatpush3.bf16.msra.mxu0 %v1398_v36  ;;  %1447 = vmatprep.subr.bf16.mxu1 %v1446_v2  ;;  %v589_v36 = vld [vmem:[#allocation5 + $0x18] sm:$0xff] }
  0x67   : > { %1403 = vmatprep.subr.bf16.mxu0 %v1402_v42  ;;  %v1462_v44 = vpack.c.bf16 %v589_v36, %v588_v34  ;;  %v790_v19 = vld [vmem:[#allocation5 + $0x158] sm:$0xff] }
  0x69   : > { %1449 = vmatpush3.bf16.msra.mxu1 %v1446_v2  ;;  %v1486_v2 = vpack.c.bf16 %v601_v1, %v600_v0 }
  0x6a   : > { %1405 = vmatpush3.bf16.msra.mxu0 %v1402_v42  ;;  %1451 = vmatprep.subr.bf16.mxu1 %v1450_v5 }
  0x6b   : > { %1407 = vmatprep.subr.bf16.mxu0 %v1406_v46 }
  0x6d   : > { %1453 = vmatpush3.bf16.msra.mxu1 %v1450_v5  ;;  %v1490_v5 = vpack.c.bf16 %v780_v4, %v779_v3 }
  0x6e   : > { %1409 = vmatpush3.bf16.msra.mxu0 %v1406_v46  ;;  %1455 = vmatprep.subr.bf16.mxu1 %v1454_v8 }
  0x6f   : > { %1411 = vmatprep.subr.bf16.mxu0 %v1410_v49 }
  0x71   : > { %1233 = vmatmul.mubr.msk.f32.vlgmr.msra.gmra.mrb[0].mxu0 %vm309_vm1, %v1908_v9  ;;  %1457 = vmatpush3.bf16.msra.mxu1 %v1454_v8  ;;  %v586_v9 = vld [vmem:[#allocation5] sm:$0xff]  ;;  %v1494_v8 = vpack.c.bf16 %v782_v7, %v781_v6 }
  0x72   : > { %1413 = vmatpush3.bf16.msra.mxu0 %v1410_v49  ;;  %1251 = vmatprep.mubr.msk.f32.mxu0 %vm309_vm1, %v480_v55  ;;  %v1458_v11 = vpack.c.bf16 %v587_v10, %v586_v9  ;;  %v590_v49 = vld [vmem:[#allocation5 + $0x20] sm:$0xff]  ;;  %v784_v10 = vld [vmem:[#allocation5 + $0x128] sm:$0xff] }
  0x73   : > { %1415 = vmatprep.subr.bf16.mxu0 %v1414_v54  ;;  %v1466_v51 = vpack.c.bf16 %v591_v50, %v590_v49  ;;  %v594_v55 = vld [vmem:[#allocation5 + $0x40] sm:$0xff] }
  0x74   : > { %1459 = vmatprep.subr.bf16.mxu1 %v1458_v11  ;;  %v1474_v57 = vpack.c.bf16 %v595_v56, %v594_v55  ;;  %v783_v9 = vld [vmem:[#allocation5 + $0x120] sm:$0xff] }
  0x76   : > { %1417 = vmatpush3.bf16.msra.mxu0 %v1414_v54  ;;  %v1470_v54 = vpack.c.bf16 %v593_v53, %v592_v52 }
  0x77   : > { %1419 = vmatprep.subr.bf16.mxu0 %v1418_v58 }
  0x7a   : > { %1421 = vmatpush3.bf16.msra.mxu0 %v1418_v58  ;;  %v596_v58 = vld [vmem:[#allocation5 + $0x50] sm:$0xff] }
  0x7b   : > { %1423 = vmatprep.subr.bf16.mxu0 %v1422_v61  ;;  %v1478_v60 = vpack.c.bf16 %v597_v59, %v596_v58 }
  0x7e   : > { %1425 = vmatpush3.bf16.msra.mxu0 %v1422_v61  ;;  %v598_v61 = vld [vmem:[#allocation5 + $0x60] sm:$0xff] }
  0x7f   : > { %1523 = vmatprep.subr.bf16.mxu0 %v1522_v14 }
  0x81   : > { %1252 = vmatmul.mubr.msk.f32.vlgmr.msra.gmra.mrb[0].mxu0 %vm309_vm1, %v482_v63  ;;  %v1482_v63 = vpack.c.bf16 %v599_v62, %v598_v61 }
  0x82   : > { %1375 = vmatprep.mubr.msk.f32.mxu0 %vm309_vm1, %v1913_v15  ;;  %1525 = vmatpush3.bf16.msra.mxu0 %v1522_v14  ;;  %v892_v15 = vld [vmem:[%s2036_s5 + $0x10] sm:$0xff]  ;;  %v1502_v14 = vpack.c.bf16 %v786_v13, %v785_v12 }
  0x83   : > { %v1526_v17 = vpack.c.bf16 %v893_v16, %v892_v15  ;;  %v787_v15 = vld [vmem:[#allocation5 + $0x140] sm:$0xff]  ;;  %v788_v16 = vld [vmem:[#allocation5 + $0x148] sm:$0xff] }
  0x85   : > { %1527 = vmatprep.subr.bf16.mxu0 %v1526_v17 }
  0x86   : > { %1529 = vmatpush3.bf16.msra.mxu0 %v1526_v17  ;;  %v1506_v17 = vpack.c.bf16 %v788_v16, %v787_v15 }
  0x87   : > { %1531 = vmatprep.subr.bf16.mxu0 %v1530_v20 }
  0x8a   : > { %1533 = vmatpush3.bf16.msra.mxu0 %v1530_v20  ;;  %v1510_v20 = vpack.c.bf16 %v790_v19, %v789_v18 }
  0x8b   : > { %1535 = vmatprep.subr.bf16.mxu0 %v1534_v23 }
  0x8e   : > { %1537 = vmatpush3.bf16.msra.mxu0 %v1534_v23  ;;  %v1514_v23 = vpack.c.bf16 %v792_v22, %v791_v21 }
  0x91   : > { %1376 = vmatmul.mubr.msk.f32.vlgmr.msra.gmra.mrb[2].mxu0 %vm309_vm1, %v1921_v35 }
 0x154   : > { %v1253_v25 = vpop.f32.mrb[0].mxu0 }
 0x155   : > { %v572_v26 = vadd.f32 %v1253_v25, %v1091_v24  ;;  %v553_v27 = vpop.f32.mrb[1].mxu0  ;;  %v794_v25 = vld [vmem:[#allocation5 + $0x178] sm:$0xff] }
 0x156   : > { %v571_v28 = vadd.f32 %v1091_v24, %v553_v27  ;;  %v793_v24 = vld [vmem:[#allocation5 + $0x170] sm:$0xff] }
 0x157   : > { %v574_v29 = vmax.f32 %v572_v26, 0.0  ;;  %v1518_v26 = vpack.c.bf16 %v794_v25, %v793_v24 }
 0x158   : > { %v573_v30 = vmax.f32 %v571_v28, 0.0 }
 0x159   : > { %v579_v31 = vrot.slane %v574_v29, 7  ;;  %v1094_v29 = vld [vmem:[%s2035_s4] ss:$0 sm:$0xff] }
 0x15a   : > { %v578_v32 = vrot.slane %v573_v30, 7 }
 0x15b   : > { %v585_v33 = vsel %vm577_vm3, %v579_v31, 0.0 }
 0x15c   : > { %v624_v37 = vrot.slane %v585_v33, 1  ;;  %v798_v38 = vrot.slane %v585_v33, 2  ;;  %v580_v35 = vsel %vm577_vm3, %v578_v32, %v579_v31  ;;  %v584_v39 = vsel %vm577_vm3, 0.0, %v578_v32 }
 0x15d   : > { %v621_v40 = vrot.slane %v584_v39, 1  ;;  %v622_v41 = vrot.slane %v580_v35, 1  ;;  %v795_v42 = vrot.slane %v584_v39, 2  ;;  %v796_v43 = vrot.slane %v580_v35, 2 }
 0x15f   : > { %v623_v45 = vsel %vm303_vm0, %v621_v40, %v622_v41  ;;  %v625_v46 = vsel %vm303_vm0, %v622_v41, %v624_v37  ;;  %v797_v47 = vsel %vm477_vm2, %v795_v42, %v796_v43  ;;  %v1975_v48 = vsel %vm477_vm2, %v796_v43, %v798_v38 }
 0x160   : > { %1286 = vmatprep.mubr.f32.mxu1 %v623_v45 }
 0x161   : > { %1287 = vmatmul.mubr.f32.vlgmr.msra.gmra.mrb[0].mxu1 %v625_v46 }
 0x162   : > { %1461 = vmatpush3.bf16.msra.mxu1 %v1458_v11  ;;  %1321 = vmatprep.mubr.msk.f32.mxu1 %vm1092_vm4, %v578_v32  ;;  %v1498_v11 = vpack.c.bf16 %v784_v10, %v783_v9 }
 0x163   : > { %1463 = vmatprep.subr.bf16.mxu1 %v1462_v44 }
 0x164   : > { %v1377_v27 = vpop.f32.mrb[2].mxu0 }
 0x165   : > { %v964_v28 = vpop.f32.mrb[3].mxu0 }
 0x166   : > { %1465 = vmatpush3.bf16.msra.mxu1 %v1462_v44 }
 0x167   : > { %1467 = vmatprep.subr.bf16.mxu1 %v1466_v51 }
 0x16a   : > { %1469 = vmatpush3.bf16.msra.mxu1 %v1466_v51 }
 0x16b   : > { %1471 = vmatprep.subr.bf16.mxu1 %v1470_v54 }
 0x16e   : > { %1473 = vmatpush3.bf16.msra.mxu1 %v1470_v54 }
 0x16f   : > { %1475 = vmatprep.subr.bf16.mxu1 %v1474_v57 }
 0x172   : > { %1477 = vmatpush3.bf16.msra.mxu1 %v1474_v57 }
 0x173   : > { %1479 = vmatprep.subr.bf16.mxu1 %v1478_v60 }
 0x176   : > { %1481 = vmatpush3.bf16.msra.mxu1 %v1478_v60 }
 0x177   : > { %1483 = vmatprep.subr.bf16.mxu1 %v1482_v63 }
 0x17a   : > { %1485 = vmatpush3.bf16.msra.mxu1 %v1482_v63 }
 0x17b   : > { %1487 = vmatprep.subr.bf16.mxu1 %v1486_v2 }
 0x17e   : > { %1489 = vmatpush3.bf16.msra.mxu1 %v1486_v2 }
 0x17f   : > { %1491 = vmatprep.subr.bf16.mxu1 %v1490_v5 }
 0x181   : > { %1322 = vmatmul.mubr.f32.vlgmr.msra.gmra.mrb[0].mxu1 %v580_v35 }
 0x182   : > { %1493 = vmatpush3.bf16.msra.mxu1 %v1490_v5  ;;  %1356 = vmatprep.mubr.f32.mxu1 %v797_v47 }
 0x183   : > { %1495 = vmatprep.subr.bf16.mxu1 %v1494_v8 }
 0x186   : > { %1497 = vmatpush3.bf16.msra.mxu1 %v1494_v8 }
 0x187   : > { %1499 = vmatprep.subr.bf16.mxu1 %v1498_v11 }
 0x18a   : > { %1501 = vmatpush3.bf16.msra.mxu1 %v1498_v11 }
 0x18b   : > { %1503 = vmatprep.subr.bf16.mxu1 %v1502_v14 }
 0x18e   : > { %1505 = vmatpush3.bf16.msra.mxu1 %v1502_v14 }
 0x18f   : > { %1507 = vmatprep.subr.bf16.mxu1 %v1506_v17 }
 0x192   : > { %1509 = vmatpush3.bf16.msra.mxu1 %v1506_v17 }
 0x193   : > { %1511 = vmatprep.subr.bf16.mxu1 %v1510_v20 }
 0x196   : > { %1513 = vmatpush3.bf16.msra.mxu1 %v1510_v20 }
 0x197   : > { %1515 = vmatprep.subr.bf16.mxu1 %v1514_v23 }
 0x19a   : > { %1517 = vmatpush3.bf16.msra.mxu1 %v1514_v23 }
 0x19b   : > { %1519 = vmatprep.subr.bf16.mxu1 %v1518_v26 }
 0x19e   : > { %1521 = vmatpush3.bf16.msra.mxu1 %v1518_v26 }
 0x1a1   : > { %1357 = vmatmul.mubr.f32.vlgmr.msra.gmra.mrb[0].mxu1 %v1975_v48 }
 0x274   : > { %v1358_v30 = vpop.f32.mrb[0].mxu1 }
 0x275   : > { %v887_v31 = vadd.f32 %v1358_v30, %v1094_v29  ;;  %v868_v32 = vpop.f32.mrb[1].mxu1 }
 0x276   : > { %v886_v33 = vadd.f32 %v1094_v29, %v868_v32 }
 0x277   : > { %v889_v34 = vmax.f32 %v887_v31, 0.0 }
 0x278   : > { %v888_v36 = vmax.f32 %v886_v33, 0.0 }
 0x279   : > { %v974_v37 = vadd.f32 %v1377_v27, %v889_v34 }
 0x27a   : > { %v973_v38 = vadd.f32 %v964_v28, %v888_v36 }
 0x27b   : > { %976 = vst [vmem:[%s274_s11 + $0x8] sm:$0xff] %v974_v37 }
 0x27c   : > { %975 = vst [vmem:[%s274_s11] sm:$0xff] %v973_v38 }
 0x27d   : > { %1680 = shalt.err (!%p1677_p11)
}
 0x27e   : > { %s1681_s18 = scalar_lea.hbm %s1988_s29, 256  ;;  %s1685_s26 = scalar_lea.hbm %s2037_s6, 512 }
 0x27f   : > { %p1682_p13 = scmp.ne.s32.totalorder %s1988_s29, %s1681_s18  ;;  %p1686_p6 = scmp.lt.u32.totalorder %s1988_s29, %s2037_s6 }
 0x280   : > { %p1687_p9 = scmp.lt.u32.totalorder %s1685_s26, %s1681_s18  ;;  %p1689_p12 = scmp.lt.u32.totalorder %s1681_s18, %s1988_s29 }
 0x281   : > { %p1683_p5 = pnand %p1682_p13, %p2050_p1 }
 0x282   : > { %p1688_p10 = por %p1687_p9, %p1686_p6 }
 0x283   : > { %p1684_p0 = pneg %p1683_p5 }
 0x284   : > { %p1690_p2 = por %p1689_p12, %p1688_p10 }
 0x286   : > { %p1691_p3 = pnand %p1690_p2, %p1684_p0 }
 0x288   : > { %1694 = shalt.err (!%p1691_p3)
}
 0x289   : > { %s1744_s15 = smov 128   ;;  %s1745_s12 = smov 8  }
 0x28a   : > { %1555 = dma.vmem_to_hbm [thread:$0]  (%p2050_p1), %s1983_s13, 256, %s1988_s29, %s1990_s9, %s1744_s15, %s1744_s15, %s1745_s12  }
 0x28b PF: > { %p1572_p4 = scmp.ge.s32.totalorder %s1737_s24, 2  ;;  %s1006_s14 = sand.u32 1, %s1725_s21  }
 0x28c   : > { %p2051_p7 = scmp.ne.s32.totalorder %s2042_s8, 0  ;;  %s1007_s10 = scalar_lea.sflag [#allocation4], %s1006_s14 }
 0x28e   : > { %p1565_p8 = pnand %p1572_p4, %p2051_p7 }
 0x290   : > { %1720 = dma.done.wait (!%p1565_p8), %s1007_s10, 256  }
 0x291   : > { %1722 = vsyncadd (!%p1565_p8), %s1007_s10, 4294967040  ;;  %p18_p11 = scmp.ge.s32.totalorder %s1806_s27, 4   ;;  %s2052_s21 = smov %s1729_s22 }
 0x292   : > { %s2053_s22 = smov %s1733_s23  ;;  %s2054_s23 = smov %s1817_s30 }
 0x293   : > { %s2055_s24 = smov %s1806_s27  ;;  %20 = sbr.rel (!%p18_p11) target bundleno = 5 (0x5), region = 92 }
 0x29a   :  { %1012 = vsyncpa [#allocation3], 1 }
 0x29b   :  { %1014 = vsyncpa [#allocation3 + $0x1], 1 }
 0x29c   :  { %1015 = vsyncpa [#allocation6], 1 }
 0x29d   :  { %1016 = vsyncpa [#allocation4], 1 }
 0x29e   :  { %1018 = vsyncpa [#allocation4 + $0x1], 1 }

</bundles_post_ra>
